<compile_context>
chip_gen: v7x
topology: tpu7x:2x2x1
jax: 0.10.0
libtpu: 0.0.40
codegen_flags: <defaults>
</compile_context>

<pallas_src>
import jax
import jax.numpy as jnp
from jax.experimental import pallas as pl
from jax.experimental.pallas import tpu as pltpu


def _conv1x1_gemv_kernel(x_ref, w_ref, b_ref, o_ref):
    # x_ref: (1, Cin), w_ref: (Cout, Cin), b_ref: (Cout, 1), o_ref: (Cout, 1)
    prod = w_ref[...] * x_ref[...]                    # VPU: broadcast x over Cout sublanes
    acc = jnp.sum(prod, axis=-1, keepdims=True)       # XLU: cross-lane reduction -> (Cout, 1)
    o_ref[...] = (acc + b_ref[...]).astype(o_ref.dtype)


def conv2d_1x1(x_nchw, weight, bias):
    """1x1 stride-1 conv specialized for N*H*W == 1: out = W @ x + b.

    x_nchw : (N, Cin, H, W) with N*H*W == 1
    weight : (Cout, Cin, 1, 1)
    bias   : (Cout,)
    returns: (N, Cout, H, W)
    """
    n, cin, h, w = x_nchw.shape
    cout = weight.shape[0]
    assert n * h * w == 1, "kernel is specialized for the module's (1, Cin, 1, 1) input"

    # Metadata-only reshapes -- no transposes, no extra HBM copies.
    x2d = x_nchw.reshape(1, cin)          # (1, Cin)      lane-dense on Cin
    w2d = weight.reshape(cout, cin)       # (Cout, Cin)   natural conv-weight layout
    b2d = bias.reshape(cout, 1)           # (Cout, 1)

    bytes_accessed = 4 * (cin + cout * cin + cout + cout)   # x + W + b + out (f32)
    out = pl.pallas_call(
        _conv1x1_gemv_kernel,
        out_shape=jax.ShapeDtypeStruct((cout, 1), x_nchw.dtype),
        grid_spec=pltpu.PrefetchScalarGridSpec(
            num_scalar_prefetch=0,
            grid=(1,),
            in_specs=[
                pl.BlockSpec((1, cin), lambda i: (0, 0)),
                pl.BlockSpec((cout, cin), lambda i: (0, 0)),
                pl.BlockSpec((cout, 1), lambda i: (0, 0)),
            ],
            out_specs=pl.BlockSpec((cout, 1), lambda i: (0, 0)),
        ),
        compiler_params=pltpu.CompilerParams(
            dimension_semantics=("arbitrary",)),
        cost_estimate=pl.CostEstimate(
            flops=2 * cout * cin + cout,
            transcendentals=0,
            bytes_accessed=bytes_accessed,
        ),
    )(x2d, w2d, b2d)

    # (Cout, 1) -> (N, Cout, H, W) is again a pure reshape (M == 1).
    return out.reshape(n, cout, h, w)


if __name__ == "__main__":
    key = jax.random.PRNGKey(0)
    k_x, k_w, k_b = jax.random.split(key, 3)

    N, CIN, COUT, H, W = 1, 2304, 96, 1, 1

    # Deterministic synthetic parameters (shapes match Conv2d(2304, 96, 1)).
    x = jax.random.normal(k_x, (N, CIN, H, W), dtype=jnp.float32)
    fan_in = CIN * 1 * 1
    bound = 1.0 / (fan_in ** 0.5)
    weight = jax.random.uniform(k_w, (COUT, CIN, 1, 1), jnp.float32, -bound, bound)
    bias = jax.random.uniform(k_b, (COUT,), jnp.float32, -bound, bound)

    out = conv2d_1x1(x, weight, bias)
    out = jax.block_until_ready(out)

    # Sanity check against a plain-JAX reference of the same math.
    ref = jnp.einsum(
        "nchw,oc->nohw", x, weight.reshape(COUT, CIN),
        precision=jax.lax.Precision.HIGHEST,
    ) + bias.reshape(1, COUT, 1, 1)
    assert out.shape == (N, COUT, H, W)
    assert jnp.allclose(out, ref, atol=1e-4, rtol=1e-4)

    print("KERNEL_OK")
</pallas_src>

<mosaic_0001>
module attributes {stable_mosaic.version = 11 : i64} {
  func.func @_conv1x1_gemv_kernel(%arg0: i32, %arg1: memref<1x2304xf32, #tpu.memory_space<vmem>>, %arg2: memref<96x2304xf32, #tpu.memory_space<vmem>>, %arg3: memref<96x1xf32, #tpu.memory_space<vmem>>, %arg4: memref<96x1xf32, #tpu.memory_space<vmem>>) attributes {dimension_semantics = [#tpu.dimension_semantics<arbitrary>], iteration_bounds = array<i64: 1>, scalar_prefetch = 0 : i64, scratch_operands = 0 : i64, tpu.core_type = #tpu.core_type<tc>, window_params = [{pipeline_mode = #tpu.pipeline_mode<synchronous>, transform_indices = @transform_0, window_bounds = array<i64: 1, 2304>}, {pipeline_mode = #tpu.pipeline_mode<synchronous>, transform_indices = @transform_1, window_bounds = array<i64: 96, 2304>}, {pipeline_mode = #tpu.pipeline_mode<synchronous>, transform_indices = @transform_2, window_bounds = array<i64: 96, 1>}, {pipeline_mode = #tpu.pipeline_mode<synchronous>, transform_indices = @transform_3, window_bounds = array<i64: 96, 1>}]} {
    %c0 = arith.constant 0 : index
    %c0_0 = arith.constant 0 : index
    %0 = vector.load %arg2[%c0, %c0_0] : memref<96x2304xf32, #tpu.memory_space<vmem>>, vector<96x2304xf32>
    %c0_1 = arith.constant 0 : index
    %c0_2 = arith.constant 0 : index
    %1 = vector.load %arg1[%c0_1, %c0_2] : memref<1x2304xf32, #tpu.memory_space<vmem>>, vector<1x2304xf32>
    %2 = vector.broadcast %1 : vector<1x2304xf32> to vector<96x2304xf32>
    %3 = arith.mulf %0, %2 : vector<96x2304xf32>
    %cst = arith.constant dense<0.000000e+00> : vector<96xf32>
    %4 = vector.multi_reduction <add>, %3, %cst [1] : vector<96x2304xf32> to vector<96xf32>
    %5 = vector.shape_cast %4 : vector<96xf32> to vector<96x1xf32>
    %c0_3 = arith.constant 0 : index
    %c0_4 = arith.constant 0 : index
    %6 = vector.load %arg3[%c0_3, %c0_4] : memref<96x1xf32, #tpu.memory_space<vmem>>, vector<96x1xf32>
    %7 = arith.addf %5, %6 : vector<96x1xf32>
    %c0_5 = arith.constant 0 : index
    %c0_6 = arith.constant 0 : index
    %8 = vector.load %arg4[%c0_5, %c0_6] : memref<96x1xf32, #tpu.memory_space<vmem>>, vector<96x1xf32>
    tpu.vector_store %arg4[%c0_5, %c0_6], %7 {strides = array<i32>} : memref<96x1xf32, #tpu.memory_space<vmem>>, vector<96x1xf32>,
    return
  }
  func.func @transform_0(%arg0: i32) -> (i32, i32) {
    %c0_i32 = arith.constant 0 : i32
    %c0_i32_0 = arith.constant 0 : i32
    %c0_i32_1 = arith.constant 0 : i32
    return %c0_i32, %c0_i32_0 : i32, i32
  }
  func.func @transform_1(%arg0: i32) -> (i32, i32) {
    %c0_i32 = arith.constant 0 : i32
    %c0_i32_0 = arith.constant 0 : i32
    %c0_i32_1 = arith.constant 0 : i32
    return %c0_i32, %c0_i32_0 : i32, i32
  }
  func.func @transform_2(%arg0: i32) -> (i32, i32) {
    %c0_i32 = arith.constant 0 : i32
    %c0_i32_0 = arith.constant 0 : i32
    %c0_i32_1 = arith.constant 0 : i32
    return %c0_i32, %c0_i32_0 : i32, i32
  }
  func.func @transform_3(%arg0: i32) -> (i32, i32) {
    %c0_i32 = arith.constant 0 : i32
    %c0_i32_0 = arith.constant 0 : i32
    %c0_i32_1 = arith.constant 0 : i32
    return %c0_i32, %c0_i32_0 : i32, i32
  }
}

</mosaic_0001>

<bundles_post_ra>
// kernel: tpu_custom_call.1
= control target key start
LH: loop header
LB: loop body
LE: loop exit
PB: predicated region body
PF: predicated region fallthrough
CT: control target
= control target key end

     0   :  { %8 = vsyncpa [#allocation3], 0  ;;  %s853_s12 = smov [#allocation2]   ;;  %s1269_s0 = inlined_call_operand.vmem [shape: f32[1,2304], index: 0, kind: input, shape index: {}]   ;;  %s1270_s1 = inlined_call_operand.hbm [shape: f32[96,2304], index: 1, kind: input, shape index: {}]   ;;  %s1271_s2 = inlined_call_operand.vmem [shape: f32[96,1], index: 2, kind: input, shape index: {}]   ;;  %s1272_s3 = inlined_call_operand.vmem [shape: f32[96,1], index: 3, kind: output, shape index: {}]  }
   0x1   :  { %s16_s13 = sshll.u32 %s853_s12, 4  ;;  %s829_s16 = scalar_lea.hbm %s1270_s1, 27648  ;;  %s17_s13 = int_to_ptr.vmem [resolvable:$true] %s16_s13 }
   0x2   :  { %p830_p0 = scmp.ne.s32.totalorder %s1270_s1, %s829_s16  ;;  %p833_p1 = scmp.lt.u32.totalorder %s829_s16, %s1270_s1 }
   0x4   :  { %p835_p2 = pnand %p833_p1, %p830_p0 }
   0x6   :  { %838 = shalt.err (!%p835_p2)
}
   0x7   :  { %s839_s21 = scalar_lea.vmem %s17_s13, 27648  ;;  %p844_p4 = scmp.lt.s32.totalorder %s17_s13, %s17_s13 }
   0x8   :  { %p840_p3 = scmp.ne.s32.totalorder %s17_s13, %s839_s21  ;;  %p845_p5 = scmp.lt.s32.totalorder %s839_s21, %s839_s21 }
   0xa   :  { %p846_p6 = por %p845_p5, %p844_p4 }
   0xc   :  { %p847_p7 = pnand %p846_p6, %p840_p3 }
   0xe   :  { %850 = shalt.err (!%p847_p7)
}
   0xf   :  { %s854_s22 = smov 2304   ;;  %s855_s23 = smov 144  }
  0x10   :  { %22 = dma.hbm_to_vmem [thread:$0]  %s1270_s1, 27648, %s17_s13, [#allocation3], %s854_s22, %s854_s22, %s855_s23  }
  0x11   :  { %851 = dma.done.wait [#allocation3], 27648  }
  0x12   :  { %852 = vsyncadd [#allocation3], 4294939648  ;;  %v250_v0 = vlaneseq  ;;  %v244_v4 = vld [vmem:[%s1269_s0] sm:$0xff]  ;;  %v65_v10 = vld [vmem:[#allocation2 + $0x128] sm:$0xff]  ;;  %vm808_vm0 = vcmask 7168  }
  0x13   :  { %v64_v9 = vld [vmem:[#allocation2 + $0x120] sm:$0xff]  ;;  %v66_v13 = vld [vmem:[#allocation2 + $0x130] sm:$0xff]  ;;  %v67_v19 = vld [vmem:[#allocation2 + $0x138] sm:$0xff] }
  0x14   :  { %v251_v1 = vshrl.u32 %v250_v0, 7  ;;  %v245_v21 = vld [vmem:[%s1269_s0 + $0x8] sm:$0xff]  ;;  %v28_v24 = vld [vmem:[#allocation2] sm:$0xff]  ;;  %v30_v31 = vld [vmem:[#allocation2 + $0x10] sm:$0xff] }
  0x15   :  { %v29_v25 = vld [vmem:[#allocation2 + $0x8] sm:$0xff]  ;;  %v68_v26 = vld [vmem:[#allocation2 + $0x140] sm:$0xff]  ;;  %v246_v37 = vld [vmem:[%s1269_s0 + $0x10] sm:$0x3] }
  0x16   :  { %v252_v2 = vsub.s32 0, %v251_v1  ;;  %v256_v3 = vsub.s32 1, %v251_v1  ;;  %v260_v5 = vsub.s32 2, %v251_v1  ;;  %v264_v8 = vsub.s32 3, %v251_v1  ;;  %v69_v32 = vld [vmem:[#allocation2 + $0x148] sm:$0xff]  ;;  %v31_v42 = vld [vmem:[#allocation2 + $0x18] sm:$0xff] }
  0x17   :  { %v268_v12 = vsub.s32 4, %v251_v1  ;;  %v272_v14 = vsub.s32 5, %v251_v1  ;;  %v276_v16 = vsub.s32 6, %v251_v1  ;;  %v280_v20 = vsub.s32 7, %v251_v1  ;;  %v70_v43 = vld [vmem:[#allocation2 + $0x150] sm:$0xff]  ;;  %v71_v44 = vld [vmem:[#allocation2 + $0x158] sm:$0xff] }
  0x18   :  { %v891_v6 = vrot.slane %v244_v4, %v252_v2  ;;  %v893_v7 = vrot.slane %v244_v4, %v256_v3  ;;  %v895_v11 = vrot.slane %v244_v4, %v260_v5  ;;  %v897_v15 = vrot.slane %v244_v4, %v264_v8  ;;  %v72_v45 = vld [vmem:[#allocation2 + $0x160] sm:$0xff]  ;;  %v82_v55 = vld [vmem:[#allocation2 + $0x1b0] sm:$0xff]  ;;  %v83_v56 = vld [vmem:[#allocation2 + $0x1b8] sm:$0xff] }
  0x19   :  { %v904_v22 = vrot.slane %v244_v4, %v268_v12  ;;  %v907_v27 = vrot.slane %v244_v4, %v272_v14  ;;  %v909_v28 = vrot.slane %v244_v4, %v276_v16  ;;  %v912_v33 = vrot.slane %v244_v4, %v280_v20  ;;  %v32_v54 = vld [vmem:[#allocation2 + $0x20] sm:$0xff]  ;;  %v73_v57 = vld [vmem:[#allocation2 + $0x168] sm:$0xff]  ;;  %v74_v58 = vld [vmem:[#allocation2 + $0x170] sm:$0xff] }
  0x1a   :  { %v376_v17 = vmul.f32 %v891_v6, %v64_v9  ;;  %v377_v18 = vmul.f32 %v893_v7, %v65_v10  ;;  %v378_v23 = vmul.f32 %v895_v11, %v66_v13  ;;  %v379_v29 = vmul.f32 %v897_v15, %v67_v19  ;;  %v75_v59 = vld [vmem:[#allocation2 + $0x178] sm:$0xff]  ;;  %v76_v0 = vld [vmem:[#allocation2 + $0x180] sm:$0xff]  ;;  %v33_v9 = vld [vmem:[#allocation2 + $0x28] sm:$0xff] }
  0x1b   :  { %v914_v34 = vrot.slane %v245_v21, %v252_v2  ;;  %v340_v35 = vmul.f32 %v891_v6, %v28_v24  ;;  %v341_v36 = vmul.f32 %v893_v7, %v29_v25  ;;  %v921_v38 = vrot.slane %v245_v21, %v256_v3  ;;  %v84_v10 = vld [vmem:[#allocation2 + $0x1c0] sm:$0xff]  ;;  %v78_v13 = vld [vmem:[#allocation2 + $0x190] sm:$0xff]  ;;  %v85_v24 = vld [vmem:[#allocation2 + $0x1c8] sm:$0xff] }
  0x1c   :  { %v594_v30 = vadd.f32 %v377_v18, %v376_v17  ;;  %v923_v39 = vrot.slane %v245_v21, %v260_v5  ;;  %v380_v40 = vmul.f32 %v904_v22, %v68_v26  ;;  %v926_v46 = vrot.slane %v245_v21, %v264_v8  ;;  %v80_v25 = vld [vmem:[#allocation2 + $0x1a0] sm:$0xff]  ;;  %v81_v26 = vld [vmem:[#allocation2 + $0x1a8] sm:$0xff] }
  0x1d   :  { %v928_v47 = vrot.slane %v245_v21, %v268_v12  ;;  %v930_v48 = vrot.slane %v245_v21, %v272_v14  ;;  %v342_v49 = vmul.f32 %v895_v11, %v30_v31  ;;  %v933_v50 = vrot.slane %v245_v21, %v276_v16  ;;  %v77_v12 = vld [vmem:[#allocation2 + $0x188] sm:$0xff]  ;;  %v79_v14 = vld [vmem:[#allocation2 + $0x198] sm:$0xff] }
  0x1e   :  { %v595_v41 = vadd.f32 %v594_v30, %v378_v23  ;;  %v935_v51 = vrot.slane %v245_v21, %v280_v20  ;;  %v381_v52 = vmul.f32 %v907_v27, %v69_v32  ;;  %v938_v60 = vrot.slane %v246_v37, %v252_v2  ;;  %v34_v23 = vld [vmem:[#allocation2 + $0x30] sm:$0xff]  ;;  %v35_v30 = vld [vmem:[#allocation2 + $0x38] sm:$0xff] }
  0x1f   :  { %v940_v61 = vrot.slane %v246_v37, %v256_v3  ;;  %v343_v62 = vmul.f32 %v897_v15, %v31_v42  ;;  %v556_v63 = vadd.f32 %v341_v36, %v340_v35  ;;  %v382_v1 = vmul.f32 %v909_v28, %v70_v43  ;;  %v36_v42 = vld [vmem:[#allocation2 + $0x40] sm:$0xff]  ;;  %v86_v43 = vld [vmem:[#allocation2 + $0x1d0] sm:$0xff] }
  0x20   :  { %v596_v53 = vadd.f32 %v595_v41, %v379_v29  ;;  %v383_v4 = vmul.f32 %v912_v33, %v71_v44  ;;  %v384_v5 = vmul.f32 %v914_v34, %v72_v45  ;;  %v344_v2 = vmul.f32 %v904_v22, %v32_v54  ;;  %v37_v44 = vld [vmem:[#allocation2 + $0x48] sm:$0xff]  ;;  %v46_v54 = vld [vmem:[#allocation2 + $0x90] sm:$0xff] }
  0x21   :  { %v557_v3 = vadd.f32 %v556_v63, %v342_v49  ;;  %v394_v16 = vmul.f32 %v891_v6, %v82_v55  ;;  %v395_v17 = vmul.f32 %v893_v7, %v83_v56  ;;  %v385_v18 = vmul.f32 %v921_v38, %v73_v57  ;;  %v47_v55 = vld [vmem:[#allocation2 + $0x98] sm:$0xff] }
  0x22   :  { %v597_v8 = vadd.f32 %v596_v53, %v380_v40  ;;  %v386_v19 = vmul.f32 %v923_v39, %v74_v58  ;;  %v952_v20 = vmul.f32 %v926_v46, %v75_v59  ;;  %v955_v29 = vmul.f32 %v928_v47, %v76_v0  ;;  %v38_v59 = vld [vmem:[#allocation2 + $0x50] sm:$0xff]  ;;  %v87_v63 = vld [vmem:[#allocation2 + $0x1d8] sm:$0xff] }
  0x23   :  { %v345_v31 = vmul.f32 %v907_v27, %v33_v9  ;;  %v558_v32 = vadd.f32 %v557_v3, %v343_v62  ;;  %v396_v35 = vmul.f32 %v895_v11, %v84_v10  ;;  %v960_v36 = vmul.f32 %v930_v48, %v77_v12  ;;  %v39_v0 = vld [vmem:[#allocation2 + $0x58] sm:$0xff] }
  0x24   :  { %v598_v21 = vadd.f32 %v597_v8, %v381_v52  ;;  %v963_v37 = vmul.f32 %v933_v50, %v78_v13  ;;  %v966_v40 = vmul.f32 %v935_v51, %v79_v14  ;;  %v346_v45 = vmul.f32 %v909_v28, %v34_v23  ;;  %v48_v13 = vld [vmem:[#allocation2 + $0xa0] sm:$0xff] }
  0x25   :  { %v559_v49 = vadd.f32 %v558_v32, %v344_v2  ;;  %v397_v52 = vmul.f32 %v897_v15, %v85_v24  ;;  %v613_v53 = vadd.f32 %v395_v17, %v394_v16  ;;  %v971_v56 = vmul.f32 %v938_v60, %v80_v25  ;;  %v41_v2 = vld [vmem:[#allocation2 + $0x68] sm:$0xff]  ;;  %v88_v16 = vld [vmem:[#allocation2 + $0x1e0] sm:$0xff]  ;;  %v43_v32 = vld [vmem:[#allocation2 + $0x78] sm:$0xff] }
  0x26   :  { %v599_v41 = vadd.f32 %v598_v21, %v382_v1  ;;  %v974_v57 = vmul.f32 %v940_v61, %v81_v26  ;;  %v347_v62 = vmul.f32 %v912_v33, %v35_v30  ;;  %v40_v1 = vld [vmem:[#allocation2 + $0x60] sm:$0xff]  ;;  %v348_v8 = vmul.f32 %v914_v34, %v36_v42  ;;  %v42_v21 = vld [vmem:[#allocation2 + $0x70] sm:$0xff]  ;;  %v49_v30 = vld [vmem:[#allocation2 + $0xa8] sm:$0xff] }
  0x27   :  { %v560_v9 = vadd.f32 %v559_v49, %v345_v31  ;;  %v398_v10 = vmul.f32 %v904_v22, %v86_v43  ;;  %v614_v12 = vadd.f32 %v613_v53, %v396_v35  ;;  %v349_v3 = vmul.f32 %v921_v38, %v37_v44  ;;  %v44_v43 = vld [vmem:[#allocation2 + $0x80] sm:$0xff] }
  0x28   :  { %v600_v58 = vadd.f32 %v599_v41, %v383_v4  ;;  %v358_v4 = vmul.f32 %v891_v6, %v46_v54  ;;  %v359_v17 = vmul.f32 %v893_v7, %v47_v55  ;;  %v350_v23 = vmul.f32 %v923_v39, %v38_v59  ;;  %v89_v41 = vld [vmem:[#allocation2 + $0x1e8] sm:$0xff]  ;;  %v50_v54 = vld [vmem:[#allocation2 + $0xb0] sm:$0xff] }
  0x29   :  { %v561_v24 = vadd.f32 %v560_v9, %v346_v45  ;;  %v399_v25 = vmul.f32 %v907_v27, %v87_v63  ;;  %v615_v26 = vadd.f32 %v614_v12, %v397_v52  ;;  %v352_v35 = vmul.f32 %v928_v47, %v40_v1  ;;  %v45_v55 = vld [vmem:[#allocation2 + $0x88] sm:$0xff]  ;;  %v91_v9 = vld [vmem:[#allocation2 + $0x1f8] sm:$0xff] }
  0x2a   :  { %v601_v14 = vadd.f32 %v600_v58, %v384_v5  ;;  %v351_v5 = vmul.f32 %v926_v46, %v39_v0  ;;  %v360_v42 = vmul.f32 %v895_v11, %v48_v13  ;;  %v988_v44 = vmul.f32 %v930_v48, %v41_v2  ;;  %v90_v58 = vld [vmem:[#allocation2 + $0x1f0] sm:$0xff]  ;;  %v51_v13 = vld [vmem:[#allocation2 + $0xb8] sm:$0xff]  ;;  %v52_v2 = vld [vmem:[#allocation2 + $0xc0] sm:$0xff] }
  0x2b   :  { %v562_v49 = vadd.f32 %v561_v24, %v347_v62  ;;  %v400_v45 = vmul.f32 %v909_v28, %v88_v16  ;;  %v616_v53 = vadd.f32 %v615_v26, %v398_v10  ;;  %v361_v59 = vmul.f32 %v897_v15, %v49_v30  ;;  %v118_v26 = vld [vmem:[#allocation2 + $0x2d0] sm:$0xff] }
  0x2c   :  { %v602_v31 = vadd.f32 %v601_v14, %v385_v18  ;;  %v992_v18 = vmul.f32 %v933_v50, %v42_v21  ;;  %v575_v63 = vadd.f32 %v359_v17, %v358_v4  ;;  %v996_v0 = vmul.f32 %v935_v51, %v43_v32  ;;  %v92_v14 = vld [vmem:[#allocation2 + $0x200] sm:$0xff] }
  0x2d   :  { %v563_v1 = vadd.f32 %v562_v49, %v348_v8  ;;  %v401_v62 = vmul.f32 %v912_v33, %v89_v41  ;;  %v617_v12 = vadd.f32 %v616_v53, %v399_v25  ;;  %v362_v16 = vmul.f32 %v904_v22, %v50_v54  ;;  %v119_v25 = vld [vmem:[#allocation2 + $0x2d8] sm:$0xff]  ;;  %v53_v54 = vld [vmem:[#allocation2 + $0xc8] sm:$0xff] }
  0x2e   :  { %v603_v52 = vadd.f32 %v602_v31, %v386_v19  ;;  %v1001_v19 = vmul.f32 %v938_v60, %v44_v43  ;;  %v576_v21 = vadd.f32 %v575_v63, %v360_v42  ;;  %v1005_v4 = vmul.f32 %v940_v61, %v45_v55  ;;  %v94_v31 = vld [vmem:[#allocation2 + $0x210] sm:$0xff]  ;;  %v95_v55 = vld [vmem:[#allocation2 + $0x218] sm:$0xff] }
  0x2f   :  { %v564_v17 = vadd.f32 %v563_v1, %v349_v3  ;;  %v402_v8 = vmul.f32 %v914_v34, %v90_v58  ;;  %v618_v24 = vadd.f32 %v617_v12, %v400_v45  ;;  %v403_v32 = vmul.f32 %v921_v38, %v91_v9  ;;  %v54_v58 = vld [vmem:[#allocation2 + $0xd0] sm:$0xff] }
  0x30   :  { %v604_v10 = vadd.f32 %v603_v52, %v952_v20  ;;  %v93_v20 = vld [vmem:[#allocation2 + $0x208] sm:$0xff]  ;;  %v363_v41 = vmul.f32 %v907_v27, %v51_v13  ;;  %v577_v43 = vadd.f32 %v576_v21, %v361_v59  ;;  %v404_v42 = vmul.f32 %v923_v39, %v92_v14  ;;  %v120_v52 = vld [vmem:[#allocation2 + $0x2e0] sm:$0xff]  ;;  %v55_v14 = vld [vmem:[#allocation2 + $0xd8] sm:$0xff] }
  0x31   :  { %v565_v49 = vadd.f32 %v564_v17, %v350_v23  ;;  %v619_v53 = vadd.f32 %v618_v24, %v401_v62  ;;  %v364_v3 = vmul.f32 %v909_v28, %v52_v2  ;;  %v430_v63 = vmul.f32 %v891_v6, %v118_v26  ;;  %v121_v62 = vld [vmem:[#allocation2 + $0x2e8] sm:$0xff]  ;;  %v122_v26 = vld [vmem:[#allocation2 + $0x2f0] sm:$0xff] }
  0x32   :  { %v605_v30 = vadd.f32 %v604_v10, %v955_v29  ;;  %v578_v29 = vadd.f32 %v577_v43, %v362_v16  ;;  %v431_v1 = vmul.f32 %v893_v7, %v119_v25  ;;  %v405_v59 = vmul.f32 %v926_v46, %v93_v20  ;;  %v96_v10 = vld [vmem:[#allocation2 + $0x220] sm:$0xff] }
  0x33   :  { %v566_v9 = vadd.f32 %v565_v49, %v351_v5  ;;  %v406_v23 = vmul.f32 %v928_v47, %v94_v31  ;;  %v620_v12 = vadd.f32 %v619_v53, %v402_v8  ;;  %v432_v16 = vmul.f32 %v895_v11, %v120_v52  ;;  %v97_v8 = vld [vmem:[#allocation2 + $0x228] sm:$0xff]  ;;  %v123_v53 = vld [vmem:[#allocation2 + $0x2f8] sm:$0xff] }
  0x34   :  { %v606_v45 = vadd.f32 %v605_v30, %v960_v36  ;;  %v365_v36 = vmul.f32 %v912_v33, %v53_v54  ;;  %v579_v2 = vadd.f32 %v578_v29, %v363_v41  ;;  %v407_v17 = vmul.f32 %v930_v48, %v95_v55  ;;  %v56_v30 = vld [vmem:[#allocation2 + $0xe0] sm:$0xff]  ;;  %v57_v54 = vld [vmem:[#allocation2 + $0xe8] sm:$0xff] }
  0x35   :  { %v567_v21 = vadd.f32 %v566_v9, %v352_v35  ;;  %v621_v24 = vadd.f32 %v620_v12, %v403_v32  ;;  %v366_v5 = vmul.f32 %v914_v34, %v54_v58  ;;  %v651_v31 = vadd.f32 %v431_v1, %v430_v63  ;;  %v100_v63 = vld [vmem:[#allocation2 + $0x240] sm:$0xff]  ;;  %v98_v9 = vld [vmem:[#allocation2 + $0x230] sm:$0xff] }
  0x36   :  { %v607_v13 = vadd.f32 %v606_v45, %v963_v37  ;;  %v580_v20 = vadd.f32 %v579_v2, %v364_v3  ;;  %v433_v37 = vmul.f32 %v897_v15, %v121_v62  ;;  %v408_v41 = vmul.f32 %v933_v50, %v96_v10  ;;  %v124_v45 = vld [vmem:[#allocation2 + $0x300] sm:$0xff]  ;;  %v58_v12 = vld [vmem:[#allocation2 + $0xf0] sm:$0xff] }
  0x37   :  { %v568_v43 = vadd.f32 %v567_v21, %v988_v44  ;;  %v622_v49 = vadd.f32 %v621_v24, %v404_v42  ;;  %v367_v35 = vmul.f32 %v921_v38, %v55_v14  ;;  %v652_v55 = vadd.f32 %v651_v31, %v432_v16  ;;  %v101_v42 = vld [vmem:[#allocation2 + $0x248] sm:$0xff]  ;;  %v102_v2 = vld [vmem:[#allocation2 + $0x250] sm:$0xff]  ;;  %v59_v16 = vld [vmem:[#allocation2 + $0xf8] sm:$0xff] }
  0x38   :  { %v608_v25 = vadd.f32 %v607_v13, %v966_v40  ;;  %v581_v52 = vadd.f32 %v580_v20, %v365_v36  ;;  %v434_v40 = vmul.f32 %v904_v22, %v122_v26  ;;  %v409_v58 = vmul.f32 %v935_v51, %v97_v8  ;;  %v125_v36 = vld [vmem:[#allocation2 + $0x308] sm:$0xff]  ;;  %v126_v24 = vld [vmem:[#allocation2 + $0x310] sm:$0xff]  ;;  %v99_v20 = vld [vmem:[#allocation2 + $0x238] sm:$0xff] }
  0x39   :  { %v569_v3 = vadd.f32 %v568_v43, %v992_v18  ;;  %v623_v29 = vadd.f32 %v622_v49, %v405_v59  ;;  %v368_v44 = vmul.f32 %v923_v39, %v56_v30  ;;  %v435_v62 = vmul.f32 %v907_v27, %v123_v53  ;;  %v103_v30 = vld [vmem:[#allocation2 + $0x258] sm:$0xff] }
  0x3a   :  { %v609_v32 = vadd.f32 %v608_v25, %v971_v56  ;;  %v582_v56 = vadd.f32 %v581_v52, %v366_v5  ;;  %v653_v13 = vadd.f32 %v652_v55, %v433_v37  ;;  %v369_v18 = vmul.f32 %v926_v46, %v57_v54  ;;  %v60_v37 = vld [vmem:[#allocation2 + $0x100] sm:$0xff]  ;;  %v127_v43 = vld [vmem:[#allocation2 + $0x318] sm:$0xff] }
  0x3b   :  { %v570_v10 = vadd.f32 %v569_v3, %v996_v0  ;;  %v624_v14 = vadd.f32 %v623_v29, %v406_v23  ;;  %v436_v59 = vmul.f32 %v909_v28, %v124_v45  ;;  %v412_v26 = vmul.f32 %v891_v6, %v100_v63  ;;  %v61_v45 = vld [vmem:[#allocation2 + $0x108] sm:$0xff]  ;;  %v128_v3 = vld [vmem:[#allocation2 + $0x320] sm:$0xff] }
  0x3c   :  { %v610_v1 = vadd.f32 %v609_v32, %v974_v57  ;;  %v583_v21 = vadd.f32 %v582_v56, %v367_v35  ;;  %v654_v57 = vadd.f32 %v653_v13, %v434_v40  ;;  %v413_v5 = vmul.f32 %v893_v7, %v101_v42  ;;  %v62_v40 = vld [vmem:[#allocation2 + $0x110] sm:$0xff]  ;;  %v129_v56 = vld [vmem:[#allocation2 + $0x328] sm:$0xff] }
  0x3d   :  { %v571_v25 = vadd.f32 %v570_v10, %v1001_v19  ;;  %v410_v0 = vmul.f32 %v938_v60, %v98_v9  ;;  %v625_v23 = vadd.f32 %v624_v14, %v407_v17  ;;  %v370_v8 = vmul.f32 %v928_v47, %v58_v12  ;;  %v104_v17 = vld [vmem:[#allocation2 + $0x260] sm:$0xff]  ;;  %v105_v9 = vld [vmem:[#allocation2 + $0x268] sm:$0xff]  ;;  %v154_v14 = vld [vmem:[#allocation2 + $0x3f0] sm:$0xff] }
  0x3e   :  { %611 = vadd.xlane.f32.xlu1 %v610_v1  ;;  %v584_v31 = vadd.f32 %v583_v21, %v368_v44  ;;  %v437_v49 = vmul.f32 %v912_v33, %v125_v36  ;;  %v655_v35 = vadd.f32 %v654_v57, %v435_v62  ;;  %v414_v53 = vmul.f32 %v895_v11, %v102_v2  ;;  %v63_v21 = vld [vmem:[#allocation2 + $0x118] sm:$0xff]  ;;  %v130_v57 = vld [vmem:[#allocation2 + $0x330] sm:$0xff] }
  0x3f   :  { %v572_v32 = vadd.f32 %v571_v25, %v1005_v4  ;;  %v626_v54 = vadd.f32 %v625_v23, %v408_v41  ;;  %v371_v19 = vmul.f32 %v930_v48, %v59_v16  ;;  %v438_v52 = vmul.f32 %v914_v34, %v126_v24  ;;  %v106_v16 = vld [vmem:[#allocation2 + $0x270] sm:$0xff]  ;;  %v156_v23 = vld [vmem:[#allocation2 + $0x400] sm:$0xff] }
  0x40   :  { %v585_v55 = vadd.f32 %v584_v31, %v369_v18  ;;  %v656_v29 = vadd.f32 %v655_v35, %v436_v59  ;;  %v415_v44 = vmul.f32 %v897_v15, %v103_v30  ;;  %v632_v63 = vadd.f32 %v413_v5, %v412_v26  ;;  %v155_v18 = vld [vmem:[#allocation2 + $0x3f8] sm:$0xff] }
  0x41   :  { %573 = vadd.xlane.f32.xlu0 %v572_v32  ;;  %v411_v42 = vmul.f32 %v940_v61, %v99_v20  ;;  %v627_v1 = vadd.f32 %v626_v54, %v409_v58  ;;  %v372_v4 = vmul.f32 %v933_v50, %v60_v37  ;;  %v439_v41 = vmul.f32 %v921_v38, %v127_v43  ;;  %v107_v20 = vld [vmem:[#allocation2 + $0x278] sm:$0xff]  ;;  %v157_v32 = vld [vmem:[#allocation2 + $0x408] sm:$0xff] }
  0x42   :  { %v586_v12 = vadd.f32 %v585_v55, %v370_v8  ;;  %v657_v62 = vadd.f32 %v656_v29, %v437_v49  ;;  %v416_v13 = vmul.f32 %v904_v22, %v104_v17  ;;  %v633_v10 = vadd.f32 %v632_v63, %v414_v53  ;;  %v131_v43 = vld [vmem:[#allocation2 + $0x338] sm:$0xff]  ;;  %v133_v55 = vld [vmem:[#allocation2 + $0x348] sm:$0xff]  ;;  %v158_v63 = vld [vmem:[#allocation2 + $0x410] sm:$0xff] }
  0x43   :  { %v628_v36 = vadd.f32 %v627_v1, %v410_v0  ;;  %v373_v59 = vmul.f32 %v935_v51, %v61_v45  ;;  %v374_v2 = vmul.f32 %v938_v60, %v62_v40  ;;  %v440_v58 = vmul.f32 %v923_v39, %v128_v3  ;;  %v132_v40 = vld [vmem:[#allocation2 + $0x340] sm:$0xff]  ;;  %v109_v1 = vld [vmem:[#allocation2 + $0x288] sm:$0xff] }
  0x44   :  { %v587_v24 = vadd.f32 %v586_v12, %v371_v19  ;;  %v658_v26 = vadd.f32 %v657_v62, %v438_v52  ;;  %v417_v5 = vmul.f32 %v907_v27, %v105_v9  ;;  %v634_v25 = vadd.f32 %v633_v10, %v415_v44  ;;  %v108_v52 = vld [vmem:[#allocation2 + $0x280] sm:$0xff] }
  0x45   :  { %v629_v8 = vadd.f32 %v628_v36, %v411_v42  ;;  %v441_v30 = vmul.f32 %v926_v46, %v129_v56  ;;  %v466_v0 = vmul.f32 %v891_v6, %v154_v14  ;;  %v467_v37 = vmul.f32 %v893_v7, %v155_v18  ;;  %v136_v10 = vld [vmem:[#allocation2 + $0x360] sm:$0xff]  ;;  %v137_v14 = vld [vmem:[#allocation2 + $0x368] sm:$0xff]  ;;  %v134_v18 = vld [vmem:[#allocation2 + $0x350] sm:$0xff] }
  0x46   :  { %v588_v31 = vadd.f32 %v587_v24, %v372_v4  ;;  %v659_v49 = vadd.f32 %v658_v26, %v439_v41  ;;  %v418_v35 = vmul.f32 %v909_v28, %v106_v16  ;;  %v635_v53 = vadd.f32 %v634_v25, %v416_v13  ;;  %v159_v13 = vld [vmem:[#allocation2 + $0x418] sm:$0xff]  ;;  %v160_v25 = vld [vmem:[#allocation2 + $0x420] sm:$0xff] }
  0x47   :  { %630 = vadd.xlane.f32.xlu1 %v629_v8  ;;  %v375_v54 = vmul.f32 %v940_v61, %v63_v21  ;;  %v442_v19 = vmul.f32 %v928_v47, %v130_v57  ;;  %v468_v17 = vmul.f32 %v895_v11, %v156_v23  ;;  %v419_v29 = vmul.f32 %v912_v33, %v107_v20  ;;  %v135_v57 = vld [vmem:[#allocation2 + $0x358] sm:$0xff]  ;;  %v138_v23 = vld [vmem:[#allocation2 + $0x370] sm:$0xff] }
  0x48   :  { %v589_v45 = vadd.f32 %v588_v31, %v373_v59  ;;  %v660_v3 = vadd.f32 %v659_v49, %v440_v58  ;;  %v636_v44 = vadd.f32 %v635_v53, %v417_v5  ;;  %v443_v42 = vmul.f32 %v930_v48, %v131_v43  ;;  %v110_v58 = vld [vmem:[#allocation2 + $0x290] sm:$0xff]  ;;  %v111_v8 = vld [vmem:[#allocation2 + $0x298] sm:$0xff] }
  0x49   :  { %v469_v4 = vmul.f32 %v897_v15, %v157_v32  ;;  %v689_v41 = vadd.f32 %v467_v37, %v466_v0  ;;  %v420_v56 = vmul.f32 %v914_v34, %v108_v52  ;;  %v444_v36 = vmul.f32 %v933_v50, %v132_v40  ;;  %v161_v32 = vld [vmem:[#allocation2 + $0x428] sm:$0xff] }
  0x4a   :  { %v590_v9 = vadd.f32 %v589_v45, %v374_v2  ;;  %v661_v12 = vadd.f32 %v660_v3, %v441_v30  ;;  %v637_v62 = vadd.f32 %v636_v44, %v418_v35  ;;  %v445_v59 = vmul.f32 %v935_v51, %v133_v55  ;;  %v112_v30 = vld [vmem:[#allocation2 + $0x2a0] sm:$0xff]  ;;  %v113_v52 = vld [vmem:[#allocation2 + $0x2a8] sm:$0xff] }
  0x4b   :  { %v470_v16 = vmul.f32 %v904_v22, %v158_v63  ;;  %v690_v21 = vadd.f32 %v689_v41, %v468_v17  ;;  %v421_v2 = vmul.f32 %v921_v38, %v109_v1  ;;  %v471_v20 = vmul.f32 %v907_v27, %v159_v13  ;;  %v114_v17 = vld [vmem:[#allocation2 + $0x2b0] sm:$0xff]  ;;  %v140_v1 = vld [vmem:[#allocation2 + $0x380] sm:$0xff] }
  0x4c   :  { %v591_v24 = vadd.f32 %v590_v9, %v375_v54  ;;  %v662_v26 = vadd.f32 %v661_v12, %v442_v19  ;;  %v638_v5 = vadd.f32 %v637_v62, %v419_v29  ;;  %v448_v37 = vmul.f32 %v891_v6, %v136_v10  ;;  %v139_v54 = vld [vmem:[#allocation2 + $0x378] sm:$0xff]  ;;  %v116_v41 = vld [vmem:[#allocation2 + $0x2c0] sm:$0xff] }
  0x4d   :  { %v691_v0 = vadd.f32 %v690_v21, %v469_v4  ;;  %v449_v31 = vmul.f32 %v893_v7, %v137_v14  ;;  %v446_v43 = vmul.f32 %v938_v60, %v134_v18  ;;  %v422_v35 = vmul.f32 %v923_v39, %v110_v58  ;;  %v115_v4 = vld [vmem:[#allocation2 + $0x2b8] sm:$0xff]  ;;  %v141_v58 = vld [vmem:[#allocation2 + $0x388] sm:$0xff] }
  0x4e   :  { %592 = vadd.xlane.f32.xlu0 %v591_v24  ;;  %v663_v49 = vadd.f32 %v662_v26, %v443_v42  ;;  %v639_v53 = vadd.f32 %v638_v5, %v420_v56  ;;  %v447_v19 = vmul.f32 %v940_v61, %v135_v57  ;;  %v472_v45 = vmul.f32 %v909_v28, %v160_v25  ;;  %v162_v42 = vld [vmem:[#allocation2 + $0x430] sm:$0xff] }
  0x4f   :  { %v692_v40 = vadd.f32 %v691_v0, %v470_v16  ;;  %v450_v55 = vmul.f32 %v895_v11, %v138_v23  ;;  %v423_v29 = vmul.f32 %v926_v46, %v111_v8  ;;  %v424_v44 = vmul.f32 %v928_v47, %v112_v30  ;;  %v190_v26 = vld [vmem:[#allocation2 + $0x510] sm:$0xff]  ;;  %v164_v8 = vld [vmem:[#allocation2 + $0x440] sm:$0xff]  ;;  %v165_v0 = vld [vmem:[#allocation2 + $0x448] sm:$0xff] }
  0x50   :  { %v664_v3 = vadd.f32 %v663_v49, %v444_v36  ;;  %v640_v63 = vadd.f32 %v639_v53, %v421_v2  ;;  %v473_v9 = vmul.f32 %v912_v33, %v161_v32  ;;  %v451_v56 = vmul.f32 %v897_v15, %v139_v54  ;;  %v163_v36 = vld [vmem:[#allocation2 + $0x438] sm:$0xff]  ;;  %v142_v30 = vld [vmem:[#allocation2 + $0x390] sm:$0xff]  ;;  %v192_v53 = vld [vmem:[#allocation2 + $0x520] sm:$0xff] }
  0x51   :  { %v693_v12 = vadd.f32 %v692_v40, %v471_v20  ;;  %v670_v62 = vadd.f32 %v449_v31, %v448_v37  ;;  %v425_v10 = vmul.f32 %v930_v48, %v113_v52  ;;  %v426_v14 = vmul.f32 %v933_v50, %v114_v17  ;;  %v191_v2 = vld [vmem:[#allocation2 + $0x518] sm:$0xff]  ;;  %v117_v20 = vld [vmem:[#allocation2 + $0x2c8] sm:$0xff]  ;;  %v166_v52 = vld [vmem:[#allocation2 + $0x450] sm:$0xff] }
  0x52   :  { %v665_v13 = vadd.f32 %v664_v3, %v445_v59  ;;  %v641_v18 = vadd.f32 %v640_v63, %v422_v35  ;;  %v474_v16 = vmul.f32 %v914_v34, %v162_v42  ;;  %v452_v24 = vmul.f32 %v904_v22, %v140_v1  ;;  %v167_v40 = vld [vmem:[#allocation2 + $0x458] sm:$0xff]  ;;  %v193_v42 = vld [vmem:[#allocation2 + $0x528] sm:$0xff] }
  0x53   :  { %v694_v21 = vadd.f32 %v693_v12, %v472_v45  ;;  %v671_v57 = vadd.f32 %v670_v62, %v450_v55  ;;  %v427_v25 = vmul.f32 %v935_v51, %v115_v4  ;;  %v428_v59 = vmul.f32 %v938_v60, %v116_v41  ;;  %v144_v41 = vld [vmem:[#allocation2 + $0x3a0] sm:$0xff]  ;;  %v169_v12 = vld [vmem:[#allocation2 + $0x468] sm:$0xff] }
  0x54   :  { %v666_v5 = vadd.f32 %v665_v13, %v446_v43  ;;  %v642_v23 = vadd.f32 %v641_v18, %v423_v29  ;;  %v475_v37 = vmul.f32 %v921_v38, %v163_v36  ;;  %v453_v49 = vmul.f32 %v907_v27, %v141_v58  ;;  %v143_v43 = vld [vmem:[#allocation2 + $0x398] sm:$0xff]  ;;  %v194_v36 = vld [vmem:[#allocation2 + $0x530] sm:$0xff] }
  0x55   :  { %v695_v31 = vadd.f32 %v694_v21, %v473_v9  ;;  %v672_v35 = vadd.f32 %v671_v57, %v451_v56  ;;  %v502_v17 = vmul.f32 %v891_v6, %v190_v26  ;;  %v503_v45 = vmul.f32 %v893_v7, %v191_v2  ;;  %v145_v21 = vld [vmem:[#allocation2 + $0x3a8] sm:$0xff] }
  0x56   :  { %v667_v32 = vadd.f32 %v666_v5, %v447_v19  ;;  %v643_v54 = vadd.f32 %v642_v23, %v424_v44  ;;  %v476_v55 = vmul.f32 %v923_v39, %v164_v8  ;;  %v454_v29 = vmul.f32 %v909_v28, %v142_v30  ;;  %v168_v19 = vld [vmem:[#allocation2 + $0x460] sm:$0xff]  ;;  %v173_v30 = vld [vmem:[#allocation2 + $0x488] sm:$0xff] }
  0x57   :  { %v696_v3 = vadd.f32 %v695_v31, %v474_v16  ;;  %v673_v63 = vadd.f32 %v672_v35, %v452_v24  ;;  %v429_v1 = vmul.f32 %v940_v61, %v117_v20  ;;  %v477_v44 = vmul.f32 %v926_v46, %v165_v0  ;;  %v195_v24 = vld [vmem:[#allocation2 + $0x538] sm:$0xff]  ;;  %v172_v8 = vld [vmem:[#allocation2 + $0x480] sm:$0xff]  ;;  %v170_v0 = vld [vmem:[#allocation2 + $0x470] sm:$0xff] }
  0x58   :  { %668 = vadd.xlane.f32.xlu1 %v667_v32  ;;  %v644_v4 = vadd.f32 %v643_v54, %v425_v10  ;;  %v504_v9 = vmul.f32 %v895_v11, %v192_v53  ;;  %v478_v56 = vmul.f32 %v928_v47, %v166_v52  ;;  %v455_v13 = vmul.f32 %v912_v33, %v143_v43  ;;  %v196_v54 = vld [vmem:[#allocation2 + $0x540] sm:$0xff]  ;;  %v174_v43 = vld [vmem:[#allocation2 + $0x490] sm:$0xff] }
  0x59   :  { %v697_v62 = vadd.f32 %v696_v3, %v475_v37  ;;  %v674_v18 = vadd.f32 %v673_v63, %v453_v49  ;;  %v479_v16 = vmul.f32 %v930_v48, %v167_v40  ;;  %v505_v10 = vmul.f32 %v897_v15, %v193_v42  ;;  %v147_v40 = vld [vmem:[#allocation2 + $0x3b8] sm:$0xff] }
  0x5a   :  { %v645_v58 = vadd.f32 %v644_v4, %v426_v14  ;;  %v727_v57 = vadd.f32 %v503_v45, %v502_v17  ;;  %v480_v26 = vmul.f32 %v933_v50, %v168_v19  ;;  %v456_v5 = vmul.f32 %v914_v34, %v144_v41  ;;  %v146_v14 = vld [vmem:[#allocation2 + $0x3b0] sm:$0xff]  ;;  %v171_v45 = vld [vmem:[#allocation2 + $0x478] sm:$0xff]  ;;  %v197_v19 = vld [vmem:[#allocation2 + $0x548] sm:$0xff] }
  0x5b   :  { %v698_v2 = vadd.f32 %v697_v62, %v476_v55  ;;  %v675_v23 = vadd.f32 %v674_v18, %v454_v29  ;;  %v481_v37 = vmul.f32 %v935_v51, %v169_v12  ;;  %v506_v31 = vmul.f32 %v904_v22, %v194_v36  ;;  %v149_v12 = vld [vmem:[#allocation2 + $0x3c8] sm:$0xff] }
  0x5c   :  { %v646_v20 = vadd.f32 %v645_v58, %v427_v25  ;;  %v728_v49 = vadd.f32 %v727_v57, %v504_v9  ;;  %v457_v53 = vmul.f32 %v921_v38, %v145_v21  ;;  %v507_v52 = vmul.f32 %v907_v27, %v195_v24  ;;  %v148_v9 = vld [vmem:[#allocation2 + $0x3c0] sm:$0xff]  ;;  %v151_v57 = vld [vmem:[#allocation2 + $0x3d8] sm:$0xff] }
  0x5d   :  { %v699_v35 = vadd.f32 %v698_v2, %v477_v44  ;;  %v676_v32 = vadd.f32 %v675_v23, %v455_v13  ;;  %v484_v25 = vmul.f32 %v891_v6, %v172_v8  ;;  %v485_v3 = vmul.f32 %v893_v7, %v173_v30  ;;  %v175_v44 = vld [vmem:[#allocation2 + $0x498] sm:$0xff]  ;;  %v176_v24 = vld [vmem:[#allocation2 + $0x4a0] sm:$0xff] }
  0x5e   :  { %v647_v17 = vadd.f32 %v646_v20, %v428_v59  ;;  %v729_v55 = vadd.f32 %v728_v49, %v505_v10  ;;  %v482_v29 = vmul.f32 %v938_v60, %v170_v0  ;;  %v458_v42 = vmul.f32 %v923_v39, %v146_v14  ;;  %v150_v10 = vld [vmem:[#allocation2 + $0x3d0] sm:$0xff]  ;;  %v199_v0 = vld [vmem:[#allocation2 + $0x558] sm:$0xff]  ;;  %v177_v14 = vld [vmem:[#allocation2 + $0x4a8] sm:$0xff] }
  0x5f   :  { %v700_v63 = vadd.f32 %v699_v35, %v478_v56  ;;  %v677_v4 = vadd.f32 %v676_v32, %v456_v5  ;;  %v508_v59 = vmul.f32 %v909_v28, %v196_v54  ;;  %v486_v13 = vmul.f32 %v895_v11, %v174_v43  ;;  %v198_v56 = vld [vmem:[#allocation2 + $0x550] sm:$0xff]  ;;  %v227_v54 = vld [vmem:[#allocation2 + $0x638] sm:$0xff] }
  0x60   :  { %v648_v41 = vadd.f32 %v647_v17, %v429_v1  ;;  %v730_v62 = vadd.f32 %v729_v55, %v506_v31  ;;  %v483_v18 = vmul.f32 %v940_v61, %v171_v45  ;;  %v459_v58 = vmul.f32 %v926_v46, %v147_v40  ;;  %v226_v32 = vld [vmem:[#allocation2 + $0x630] sm:$0xff]  ;;  %v200_v45 = vld [vmem:[#allocation2 + $0x560] sm:$0xff] }
  0x61   :  { %v701_v36 = vadd.f32 %v700_v63, %v479_v16  ;;  %v678_v21 = vadd.f32 %v677_v4, %v457_v53  ;;  %v509_v1 = vmul.f32 %v912_v33, %v197_v19  ;;  %v487_v5 = vmul.f32 %v897_v15, %v175_v44  ;;  %v178_v40 = vld [vmem:[#allocation2 + $0x4b0] sm:$0xff]  ;;  %v152_v55 = vld [vmem:[#allocation2 + $0x3e0] sm:$0xff] }
  0x62   :  { %649 = vadd.xlane.f32.xlu0 %v648_v41  ;;  %v731_v2 = vadd.f32 %v730_v62, %v507_v52  ;;  %v708_v23 = vadd.f32 %v485_v3, %v484_v25  ;;  %v460_v30 = vmul.f32 %v928_v47, %v148_v9  ;;  %v461_v20 = vmul.f32 %v930_v48, %v149_v12  ;;  %v228_v4 = vld [vmem:[#allocation2 + $0x640] sm:$0xff]  ;;  %v201_v41 = vld [vmem:[#allocation2 + $0x568] sm:$0xff]  ;;  %v179_v9 = vld [vmem:[#allocation2 + $0x4b8] sm:$0xff] }
  0x63   :  { %v702_v8 = vadd.f32 %v701_v36, %v480_v26  ;;  %v679_v16 = vadd.f32 %v678_v21, %v458_v42  ;;  %v510_v31 = vmul.f32 %v914_v34, %v198_v56  ;;  %v488_v35 = vmul.f32 %v904_v22, %v176_v24  ;;  %v229_v21 = vld [vmem:[#allocation2 + $0x648] sm:$0xff] }
  0x64   :  { %v732_v49 = vadd.f32 %v731_v2, %v508_v59  ;;  %v709_v53 = vadd.f32 %v708_v23, %v486_v13  ;;  %v462_v43 = vmul.f32 %v933_v50, %v150_v10  ;;  %v463_v26 = vmul.f32 %v935_v51, %v151_v57  ;;  %v153_v59 = vld [vmem:[#allocation2 + $0x3e8] sm:$0xff]  ;;  %v180_v57 = vld [vmem:[#allocation2 + $0x4c0] sm:$0xff]  ;;  %v203_v2 = vld [vmem:[#allocation2 + $0x578] sm:$0xff] }
  0x65   :  { %v703_v52 = vadd.f32 %v702_v8, %v481_v37  ;;  %v680_v17 = vadd.f32 %v679_v16, %v459_v58  ;;  %v511_v25 = vmul.f32 %v921_v38, %v199_v0  ;;  %v489_v63 = vmul.f32 %v907_v27, %v177_v14  ;;  %v230_v16 = vld [vmem:[#allocation2 + $0x650] sm:$0xff] }
  0x66   :  { %v733_v3 = vadd.f32 %v732_v49, %v509_v1  ;;  %v710_v42 = vadd.f32 %v709_v53, %v487_v5  ;;  %v538_v37 = vmul.f32 %v891_v6, %v226_v32  ;;  %v539_v12 = vmul.f32 %v893_v7, %v227_v54  ;;  %v182_v32 = vld [vmem:[#allocation2 + $0x4d0] sm:$0xff] }
  0x67   :  { %v704_v19 = vadd.f32 %v703_v52, %v482_v29  ;;  %v681_v44 = vadd.f32 %v680_v17, %v460_v30  ;;  %v512_v62 = vmul.f32 %v923_v39, %v200_v45  ;;  %v490_v36 = vmul.f32 %v909_v28, %v178_v40  ;;  %v202_v29 = vld [vmem:[#allocation2 + $0x570] sm:$0xff]  ;;  %v231_v17 = vld [vmem:[#allocation2 + $0x658] sm:$0xff] }
  0x68   :  { %v734_v13 = vadd.f32 %v733_v3, %v510_v31  ;;  %v711_v58 = vadd.f32 %v710_v42, %v488_v35  ;;  %v464_v24 = vmul.f32 %v938_v60, %v152_v55  ;;  %v540_v1 = vmul.f32 %v895_v11, %v228_v4  ;;  %v181_v31 = vld [vmem:[#allocation2 + $0x4c8] sm:$0xff] }
  0x69   :  { %v705_v56 = vadd.f32 %v704_v19, %v483_v18  ;;  %v682_v10 = vadd.f32 %v681_v44, %v461_v20  ;;  %v513_v5 = vmul.f32 %v926_v46, %v201_v41  ;;  %v491_v8 = vmul.f32 %v912_v33, %v179_v9  ;;  %v204_v18 = vld [vmem:[#allocation2 + $0x580] sm:$0xff]  ;;  %v209_v3 = vld [vmem:[#allocation2 + $0x5a8] sm:$0xff] }
  0x6a   :  { %v735_v23 = vadd.f32 %v734_v13, %v511_v25  ;;  %v712_v30 = vadd.f32 %v711_v58, %v489_v63  ;;  %v465_v0 = vmul.f32 %v940_v61, %v153_v59  ;;  %v541_v20 = vmul.f32 %v897_v15, %v229_v21  ;;  %v205_v63 = vld [vmem:[#allocation2 + $0x588] sm:$0xff]  ;;  %v232_v41 = vld [vmem:[#allocation2 + $0x660] sm:$0xff]  ;;  %v206_v13 = vld [vmem:[#allocation2 + $0x590] sm:$0xff] }
  0x6b   :  { %706 = vadd.xlane.f32.xlu1 %v705_v56  ;;  %v683_v14 = vadd.f32 %v682_v10, %v462_v43  ;;  %v765_v49 = vadd.f32 %v539_v12, %v538_v37  ;;  %v514_v35 = vmul.f32 %v928_v47, %v202_v29  ;;  %v492_v54 = vmul.f32 %v914_v34, %v180_v57  ;;  %v208_v43 = vld [vmem:[#allocation2 + $0x5a0] sm:$0xff]  ;;  %v183_v37 = vld [vmem:[#allocation2 + $0x4d8] sm:$0xff]  ;;  %v233_v56 = vld [vmem:[#allocation2 + $0x668] sm:$0xff] }
  0x6c   :  { %v736_v53 = vadd.f32 %v735_v23, %v512_v62  ;;  %v713_v52 = vadd.f32 %v712_v30, %v490_v36  ;;  %v515_v40 = vmul.f32 %v930_v48, %v203_v2  ;;  %v542_v55 = vmul.f32 %v904_v22, %v230_v16  ;;  %v210_v62 = vld [vmem:[#allocation2 + $0x5b0] sm:$0xff]  ;;  %v184_v58 = vld [vmem:[#allocation2 + $0x4e0] sm:$0xff]  ;;  %v207_v23 = vld [vmem:[#allocation2 + $0x598] sm:$0xff] }
  0x6d   :  { %v684_v45 = vadd.f32 %v683_v14, %v463_v26  ;;  %v766_v25 = vadd.f32 %v765_v49, %v540_v1  ;;  %v516_v42 = vmul.f32 %v933_v50, %v204_v18  ;;  %v493_v19 = vmul.f32 %v921_v38, %v181_v31  ;;  %v185_v30 = vld [vmem:[#allocation2 + $0x4e8] sm:$0xff]  ;;  %v234_v18 = vld [vmem:[#allocation2 + $0x670] sm:$0xff]  ;;  %v212_v49 = vld [vmem:[#allocation2 + $0x5c0] sm:$0xff] }
  0x6e   :  { %v737_v4 = vadd.f32 %v736_v53, %v513_v5  ;;  %v714_v44 = vadd.f32 %v713_v52, %v491_v8  ;;  %v494_v12 = vmul.f32 %v923_v39, %v182_v32  ;;  %v543_v26 = vmul.f32 %v907_v27, %v231_v17  ;;  %v211_v5 = vld [vmem:[#allocation2 + $0x5b8] sm:$0xff]  ;;  %v186_v53 = vld [vmem:[#allocation2 + $0x4f0] sm:$0xff] }
  0x6f   :  { %v685_v9 = vadd.f32 %v684_v45, %v464_v24  ;;  %v767_v59 = vadd.f32 %v766_v25, %v541_v20  ;;  %v520_v10 = vmul.f32 %v891_v6, %v208_v43  ;;  %v521_v29 = vmul.f32 %v893_v7, %v209_v3  ;;  %v213_v25 = vld [vmem:[#allocation2 + $0x5c8] sm:$0xff]  ;;  %v187_v3 = vld [vmem:[#allocation2 + $0x4f8] sm:$0xff] }
  0x70   :  { %v738_v36 = vadd.f32 %v737_v4, %v514_v35  ;;  %v715_v21 = vadd.f32 %v714_v44, %v492_v54  ;;  %v517_v1 = vmul.f32 %v935_v51, %v205_v63  ;;  %v544_v24 = vmul.f32 %v909_v28, %v232_v41  ;;  %v235_v54 = vld [vmem:[#allocation2 + $0x678] sm:$0xff]  ;;  %v236_v4 = vld [vmem:[#allocation2 + $0x680] sm:$0xff] }
  0x71   :  { %v686_v57 = vadd.f32 %v685_v9, %v465_v0  ;;  %v768_v2 = vadd.f32 %v767_v59, %v542_v55  ;;  %v495_v16 = vmul.f32 %v926_v46, %v183_v37  ;;  %v522_v31 = vmul.f32 %v895_v11, %v210_v62  ;;  %v214_v9 = vld [vmem:[#allocation2 + $0x5d0] sm:$0xff] }
  0x72   :  { %v739_v8 = vadd.f32 %v738_v36, %v515_v40  ;;  %v716_v14 = vadd.f32 %v715_v21, %v493_v19  ;;  %v518_v6 = vmul.f32 %v938_v60, %v206_v13  ;;  %v496_v7 = vmul.f32 %v928_v47, %v184_v58  ;;  %v188_v13 = vld [vmem:[#allocation2 + $0x500] sm:$0xff] }
  0x73   :  { %687 = vadd.xlane.f32.xlu0 %v686_v57  ;;  %v545_v0 = vmul.f32 %v912_v33, %v233_v56  ;;  %v769_v20 = vadd.f32 %v768_v2, %v543_v26  ;;  %v523_v52 = vmul.f32 %v897_v15, %v211_v5  ;;  %v746_v17 = vadd.f32 %v521_v29, %v520_v10  ;;  %v237_v26 = vld [vmem:[#allocation2 + $0x688] sm:$0xff]  ;;  %v238_v29 = vld [vmem:[#allocation2 + $0x690] sm:$0xff] }
  0x74   :  { %v740_v35 = vadd.f32 %v739_v8, %v516_v42  ;;  %v717_v32 = vadd.f32 %v716_v14, %v494_v12  ;;  %v519_v45 = vmul.f32 %v940_v61, %v207_v23  ;;  %v497_v11 = vmul.f32 %v930_v48, %v185_v30  ;;  %v216_v23 = vld [vmem:[#allocation2 + $0x5e0] sm:$0xff]  ;;  %v239_v30 = vld [vmem:[#allocation2 + $0x698] sm:$0xff] }
  0x75   :  { %v546_v40 = vmul.f32 %v914_v34, %v234_v18  ;;  %v770_v55 = vadd.f32 %v769_v20, %v544_v24  ;;  %v524_v42 = vmul.f32 %v904_v22, %v212_v49  ;;  %v747_v19 = vadd.f32 %v746_v17, %v522_v31  ;;  %v215_v22 = vld [vmem:[#allocation2 + $0x5d8] sm:$0xff]  ;;  %v189_v24 = vld [vmem:[#allocation2 + $0x508] sm:$0xff] }
  0x76   :  { %v741_v43 = vadd.f32 %v740_v35, %v517_v1  ;;  %v718_v63 = vadd.f32 %v717_v32, %v495_v16  ;;  %v498_v44 = vmul.f32 %v933_v50, %v186_v53  ;;  %v547_v15 = vmul.f32 %v921_v38, %v235_v54  ;;  %v218_v32 = vld [vmem:[#allocation2 + $0x5f0] sm:$0xff] }
  0x77   :  { %v771_v41 = vadd.f32 %v770_v55, %v545_v0  ;;  %v525_v59 = vmul.f32 %v907_v27, %v213_v25  ;;  %v748_v62 = vadd.f32 %v747_v19, %v523_v52  ;;  %v499_v36 = vmul.f32 %v935_v51, %v187_v3  ;;  %v240_v0 = vld [vmem:[#allocation2 + $0x6a0] sm:$0xff]  ;;  %v241_v52 = vld [vmem:[#allocation2 + $0x6a8] sm:$0xff]  ;;  %v242_v25 = vld [vmem:[#allocation2 + $0x6b0] sm:$0xff] }
  0x78   :  { %v742_v37 = vadd.f32 %v741_v43, %v518_v6  ;;  %v719_v12 = vadd.f32 %v718_v63, %v496_v7  ;;  %v548_v58 = vmul.f32 %v923_v39, %v236_v4  ;;  %v526_v57 = vmul.f32 %v909_v28, %v214_v9  ;;  %v217_v6 = vld [vmem:[#allocation2 + $0x5e8] sm:$0xff]  ;;  %v220_v4 = vld [vmem:[#allocation2 + $0x600] sm:$0xff] }
  0x79   :  { %v772_v21 = vadd.f32 %v771_v41, %v546_v40  ;;  %v749_v1 = vadd.f32 %v748_v62, %v524_v42  ;;  %v549_v2 = vmul.f32 %v926_v46, %v237_v26  ;;  %v500_v27 = vmul.f32 %v938_v60, %v188_v13  ;;  %v219_v40 = vld [vmem:[#allocation2 + $0x5f8] sm:$0xff]  ;;  %v221_v41 = vld [vmem:[#allocation2 + $0x608] sm:$0xff]  ;;  %v222_v26 = vld [vmem:[#allocation2 + $0x610] sm:$0xff] }
  0x7a   :  { %v743_v56 = vadd.f32 %v742_v37, %v519_v45  ;;  %v720_v10 = vadd.f32 %v719_v12, %v497_v11  ;;  %v527_v16 = vmul.f32 %v912_v33, %v215_v22  ;;  %v550_v18 = vmul.f32 %v928_v47, %v238_v29  ;;  %v243_v42 = vld [vmem:[#allocation2 + $0x6b8] sm:$0xff]  ;;  %v224_v22 = vld [vmem:[#allocation2 + $0x620] sm:$0xff] }
  0x7b   :  { %v773_v5 = vadd.f32 %v772_v21, %v547_v15  ;;  %v750_v14 = vadd.f32 %v749_v1, %v525_v59  ;;  %v501_v28 = vmul.f32 %v940_v61, %v189_v24  ;;  %v528_v20 = vmul.f32 %v914_v34, %v216_v23 }
  0x7c   :  { %744 = vadd.xlane.f32.xlu1 %v743_v56  ;;  %v721_v8 = vadd.f32 %v720_v10, %v498_v44  ;;  %v551_v35 = vmul.f32 %v930_v48, %v239_v30  ;;  %v529_v33 = vmul.f32 %v921_v38, %v217_v6  ;;  %v552_v45 = vmul.f32 %v933_v50, %v240_v0 }
  0x7d   :  { %v774_v31 = vadd.f32 %v773_v5, %v548_v58  ;;  %v751_v49 = vadd.f32 %v750_v14, %v526_v57  ;;  %v530_v43 = vmul.f32 %v923_v39, %v218_v32  ;;  %v553_v34 = vmul.f32 %v935_v51, %v241_v52  ;;  %v790_v32 = vld [vmem:[%s1271_s2 + $0x30] sm:$0xff] }
  0x7e   :  { %v722_v7 = vadd.f32 %v721_v8, %v499_v36  ;;  %v531_v19 = vmul.f32 %v926_v46, %v219_v40  ;;  %v554_v38 = vmul.f32 %v938_v60, %v242_v25  ;;  %v532_v9 = vmul.f32 %v928_v47, %v220_v4  ;;  %v223_v36 = vld [vmem:[#allocation2 + $0x618] sm:$0xff]  ;;  %v225_v47 = vld [vmem:[#allocation2 + $0x628] sm:$0xff] }
  0x7f   :  { %v775_v53 = vadd.f32 %v774_v31, %v549_v2  ;;  %v752_v17 = vadd.f32 %v751_v49, %v527_v16  ;;  %v555_v12 = vmul.f32 %v940_v61, %v243_v42  ;;  %v533_v59 = vmul.f32 %v930_v48, %v221_v41  ;;  %v785_v16 = vld [vmem:[%s1271_s2 + $0x8] sm:$0xff]  ;;  %v791_v49 = vld [vmem:[%s1271_s2 + $0x38] sm:$0xff] }
  0x80   :  { %v723_v54 = vadd.f32 %v722_v7, %v500_v27  ;;  %v534_v58 = vmul.f32 %v933_v50, %v222_v26  ;;  %v535_v56 = vmul.f32 %v935_v51, %v223_v36  ;;  %v536_v29 = vmul.f32 %v938_v60, %v224_v22  ;;  %v786_v50 = vld [vmem:[%s1271_s2 + $0x10] sm:$0xff]  ;;  %v784_v51 = vld [vmem:[%s1271_s2] sm:$0xff]  ;;  %v787_v27 = vld [vmem:[%s1271_s2 + $0x18] sm:$0xff] }
  0x81   :  { %v776_v11 = vadd.f32 %v775_v53, %v550_v18  ;;  %v753_v3 = vadd.f32 %v752_v17, %v528_v20  ;;  %v537_v1 = vmul.f32 %v940_v61, %v225_v47  ;;  %v789_v31 = vld [vmem:[%s1271_s2 + $0x28] sm:$0xff]  ;;  %v788_v7 = vld [vmem:[%s1271_s2 + $0x20] sm:$0xff]  ;;  %v795_v25 = vld [vmem:[%s1271_s2 + $0x58] sm:$0xff] }
  0x82   :  { %v724_v55 = vadd.f32 %v723_v54, %v501_v28 }
  0x83   :  { %v777_v63 = vadd.f32 %v776_v11, %v551_v35  ;;  %v754_v44 = vadd.f32 %v753_v3, %v529_v33  ;;  %v793_v33 = vld [vmem:[%s1271_s2 + $0x48] sm:$0xff]  ;;  %v792_v11 = vld [vmem:[%s1271_s2 + $0x40] sm:$0xff] }
  0x84   :  { %725 = vadd.xlane.f32.xlu0 %v724_v55 }
  0x85   :  { %v778_v15 = vadd.f32 %v777_v63, %v552_v45  ;;  %v755_v37 = vadd.f32 %v754_v44, %v530_v43 }
  0x87   :  { %v779_v39 = vadd.f32 %v778_v15, %v553_v34  ;;  %v756_v62 = vadd.f32 %v755_v37, %v531_v19  ;;  %v794_v34 = vld [vmem:[%s1271_s2 + $0x50] sm:$0xff] }
  0x89   :  { %v780_v13 = vadd.f32 %v779_v39, %v554_v38  ;;  %v757_v46 = vadd.f32 %v756_v62, %v532_v9 }
  0x8b   :  { %v781_v21 = vadd.f32 %v780_v13, %v555_v12  ;;  %v758_v10 = vadd.f32 %v757_v46, %v533_v59 }
  0x8d   :  { %782 = vadd.xlane.f32.xlu1 %v781_v21  ;;  %v759_v57 = vadd.f32 %v758_v10, %v534_v58 }
  0x8f   :  { %v760_v24 = vadd.f32 %v759_v57, %v535_v56 }
  0x91   :  { %v761_v48 = vadd.f32 %v760_v24, %v536_v29 }
  0x93   :  { %v762_v2 = vadd.f32 %v761_v48, %v537_v1 }
  0x95   :  { %763 = vadd.xlane.f32.xlu0 %v762_v2 }
  0xcb   :  { %v612_v5 = vpop.xlane.xlu1 %611 }
  0xcc   :  { %v798_v23 = vadd.f32 %v786_v50, %v612_v5 }
  0xce   :  { %811 = vst.msk [vmem:[%s1272_s3 + $0x10] sm:$0xff] %vm808_vm0, %v798_v23  ;;  %v574_v60 = vpop.xlane.xlu0 %573 }
  0xcf   :  { %v796_v61 = vadd.f32 %v784_v51, %v574_v60 }
  0xd1   :  { %809 = vst.msk [vmem:[%s1272_s3] sm:$0xff] %vm808_vm0, %v796_v61 }
  0xd4   :  { %v631_v8 = vpop.xlane.xlu1 %630 }
  0xd5   :  { %v799_v30 = vadd.f32 %v787_v27, %v631_v8 }
  0xd7   :  { %812 = vst.msk [vmem:[%s1272_s3 + $0x18] sm:$0xff] %vm808_vm0, %v799_v30 }
  0xdb   :  { %v593_v14 = vpop.xlane.xlu0 %592 }
  0xdc   :  { %v797_v18 = vadd.f32 %v785_v16, %v593_v14 }
  0xde   :  { %810 = vst.msk [vmem:[%s1272_s3 + $0x8] sm:$0xff] %vm808_vm0, %v797_v18 }
  0xe5   :  { %v669_v6 = vpop.xlane.xlu1 %668 }
  0xe6   :  { %v801_v28 = vadd.f32 %v789_v31, %v669_v6 }
  0xe8   :  { %814 = vst.msk [vmem:[%s1272_s3 + $0x28] sm:$0xff] %vm808_vm0, %v801_v28 }
  0xef   :  { %v650_v0 = vpop.xlane.xlu0 %649 }
  0xf0   :  { %v800_v20 = vadd.f32 %v788_v7, %v650_v0 }
  0xf2   :  { %813 = vst.msk [vmem:[%s1272_s3 + $0x20] sm:$0xff] %vm808_vm0, %v800_v20 }
  0xf8   :  { %v707_v35 = vpop.xlane.xlu1 %706 }
  0xf9   :  { %v803_v53 = vadd.f32 %v791_v49, %v707_v35 }
  0xfb   :  { %816 = vst.msk [vmem:[%s1272_s3 + $0x38] sm:$0xff] %vm808_vm0, %v803_v53 }
 0x100   :  { %v688_v54 = vpop.xlane.xlu0 %687 }
 0x101   :  { %v802_v52 = vadd.f32 %v790_v32, %v688_v54 }
 0x103   :  { %815 = vst.msk [vmem:[%s1272_s3 + $0x30] sm:$0xff] %vm808_vm0, %v802_v52 }
 0x109   :  { %v745_v17 = vpop.xlane.xlu1 %744 }
 0x10a   :  { %v805_v45 = vadd.f32 %v793_v33, %v745_v17 }
 0x10c   :  { %818 = vst.msk [vmem:[%s1272_s3 + $0x48] sm:$0xff] %vm808_vm0, %v805_v45 }
 0x111   :  { %v726_v40 = vpop.xlane.xlu0 %725 }
 0x112   :  { %v804_v55 = vadd.f32 %v792_v11, %v726_v40 }
 0x114   :  { %817 = vst.msk [vmem:[%s1272_s3 + $0x40] sm:$0xff] %vm808_vm0, %v804_v55 }
 0x11a   :  { %v783_v43 = vpop.xlane.xlu1 %782 }
 0x11b   :  { %v807_v3 = vadd.f32 %v795_v25, %v783_v43 }
 0x11d   :  { %820 = vst.msk [vmem:[%s1272_s3 + $0x58] sm:$0xff] %vm808_vm0, %v807_v3 }
 0x122   :  { %v764_v63 = vpop.xlane.xlu0 %763 }
 0x123   :  { %v806_v4 = vadd.f32 %v794_v34, %v764_v63 }
 0x125   :  { %819 = vst.msk [vmem:[%s1272_s3 + $0x50] sm:$0xff] %vm808_vm0, %v806_v4 }
 0x126   :  { %825 = vsyncpa [#allocation3], 1 }

</bundles_post_ra>
